<compile_context>
chip_gen: v6e
topology: v6e:2x2x1
jax: 0.10.0
libtpu: 0.0.40
codegen_flags: <defaults>
</compile_context>

<pallas_src>
import jax
import jax.numpy as jnp
from jax.experimental import pallas as pl
from jax.experimental.pallas import tpu as pltpu

HIDDEN = 256        # fixed by the module definition (fc1 -> 256)
OUT_PAD = 128       # lane-dense padded output width
NEG_FILL = -1e30    # bias fill for padded logit lanes -> exp() underflows to 0


def _round_up(x, m):
    return (x + m - 1) // m * m


def _ann_v1_kernel(x_ref, w1_ref, b1_ref, w2_ref, b2_ref, o_ref):
    # x: (TB, inputs) bf16 ; W1: (inputs, 256) bf16 ; W2: (256, OUT_PAD) bf16
    # b1: (1, 256) f32 ; b2: (1, OUT_PAD) f32 (padded lanes = NEG_FILL)

    # fc1 + ReLU  (bf16 x bf16 MXU matmul, f32 accumulate)
    h = jnp.dot(x_ref[...], w1_ref[...], preferred_element_type=jnp.float32)
    h = jnp.maximum(h + b1_ref[...], 0.0)

    # fc2 -> logits (TB, OUT_PAD); keep fc2 in f32 (tiny resident W2 tile) so
    # the softmax input matches the f32 reference closely.
    logits = jnp.dot(h, w2_ref[...].astype(jnp.float32),
                     preferred_element_type=jnp.float32) + b2_ref[...]

    # numerically-stable softmax over the outputs axis (padded lanes -> 0).
    # Exact division: every row then sums to 1 within f32 rounding.
    m = jnp.max(logits, axis=-1, keepdims=True)
    e = jnp.exp(logits - m)
    denom = jnp.sum(e, axis=-1, keepdims=True)
    o_ref[...] = (e / denom).astype(o_ref.dtype)


def ann_v1_forward(x, w1, b1, w2, b2):
    """ANN_V1 forward.

    x: (inputs,) or (B, inputs) float32.
    Returns (outputs,) or (B, outputs) float32 softmax probabilities
    (per-sample softmax over the output logits).
    """
    squeeze = x.ndim == 1
    x2 = x.reshape(1, -1) if squeeze else x
    B, inputs = x2.shape
    outputs = w2.shape[1]

    # ---- batch tiling: TB >= 8 (f32 sublane), up to 128 rows per grid step
    TB = min(128, _round_up(B, 8))
    B_pad = _round_up(B, TB)
    out_pad = _round_up(outputs, OUT_PAD)

    # ---- one-time dtype / padding prep (bf16 weights, lane-dense output)
    xb = jnp.zeros((B_pad, inputs), jnp.bfloat16).at[:B].set(
        x2.astype(jnp.bfloat16))
    w1b = w1.astype(jnp.bfloat16)
    w2b = jnp.zeros((HIDDEN, out_pad), jnp.bfloat16).at[:, :outputs].set(
        w2.astype(jnp.bfloat16))
    b1r = b1.reshape(1, HIDDEN).astype(jnp.float32)
    b2r = jnp.full((1, out_pad), NEG_FILL, jnp.float32).at[0, :outputs].set(
        b2.astype(jnp.float32))

    grid = (B_pad // TB,)
    flops = 2 * B_pad * (inputs * HIDDEN + HIDDEN * out_pad)
    bytes_accessed = (xb.size * 2 + w1b.size * 2 + w2b.size * 2
                      + b1r.size * 4 + b2r.size * 4 + B_pad * out_pad * 4)

    out = pl.pallas_call(
        _ann_v1_kernel,
        out_shape=jax.ShapeDtypeStruct((B_pad, out_pad), jnp.float32),
        grid_spec=pltpu.PrefetchScalarGridSpec(
            num_scalar_prefetch=0,
            grid=grid,
            in_specs=[
                # batch-tiled activations
                pl.BlockSpec((TB, inputs), lambda i: (i, 0)),
                # weights/biases: constant block index -> loaded once, resident
                pl.BlockSpec((inputs, HIDDEN), lambda i: (0, 0)),
                pl.BlockSpec((1, HIDDEN), lambda i: (0, 0)),
                pl.BlockSpec((HIDDEN, out_pad), lambda i: (0, 0)),
                pl.BlockSpec((1, out_pad), lambda i: (0, 0)),
            ],
            out_specs=pl.BlockSpec((TB, out_pad), lambda i: (i, 0)),
        ),
        compiler_params=pltpu.CompilerParams(
            dimension_semantics=("parallel",),  # 2x on v7x (2 TCs), no-op v5e/v6e
        ),
        cost_estimate=pl.CostEstimate(
            flops=flops,
            transcendentals=B_pad * out_pad,
            bytes_accessed=bytes_accessed,
        ),
    )(xb, w1b, b1r, w2b, b2r)

    out = out[:B, :outputs]
    return out[0] if squeeze else out


def init_params(key, inputs, outputs):
    """Deterministic init matching torch.nn.Linear defaults:
    U(-1/sqrt(fan_in), 1/sqrt(fan_in)) for weights and biases."""
    k1, k2, k3, k4 = jax.random.split(key, 4)
    bound1 = 1.0 / jnp.sqrt(float(inputs))
    bound2 = 1.0 / jnp.sqrt(float(HIDDEN))
    # Stored transposed relative to PyTorch (out,in) -> here (in,out).
    w1 = jax.random.uniform(k1, (inputs, HIDDEN), jnp.float32, -bound1, bound1)
    b1 = jax.random.uniform(k2, (HIDDEN,), jnp.float32, -bound1, bound1)
    w2 = jax.random.uniform(k3, (HIDDEN, outputs), jnp.float32, -bound2, bound2)
    b2 = jax.random.uniform(k4, (outputs,), jnp.float32, -bound2, bound2)
    return w1, b1, w2, b2


def reference_forward(x, w1, b1, w2, b2):
    """Pure-JAX reference (per-sample softmax over outputs)."""
    h = jnp.maximum(x @ w1 + b1, 0.0)
    logits = h @ w2 + b2
    return jax.nn.softmax(logits, axis=-1)


if __name__ == "__main__":
    INPUTS, OUTPUTS, BATCH = 16, 8, 32

    key = jax.random.PRNGKey(0)
    kx, kp = jax.random.split(key)
    x = jax.random.normal(kx, (BATCH, INPUTS), jnp.float32)
    w1, b1, w2, b2 = init_params(kp, INPUTS, OUTPUTS)

    out = jax.block_until_ready(ann_v1_forward(x, w1, b1, w2, b2))
    assert out.shape == (BATCH, OUTPUTS)

    # Reference uses the same bf16-rounded operands the kernel consumes.
    xq = x.astype(jnp.bfloat16).astype(jnp.float32)
    w1q = w1.astype(jnp.bfloat16).astype(jnp.float32)
    w2q = w2.astype(jnp.bfloat16).astype(jnp.float32)
    ref = reference_forward(xq, w1q, b1, w2q, b2)

    assert jnp.allclose(out, ref, atol=2e-3, rtol=2e-3)
    # Exact in-kernel division -> rows sum to 1 within f32 rounding.
    assert jnp.allclose(jnp.sum(out, axis=-1), 1.0, atol=1e-3)

    # Single 1-D state path (canonical REINFORCE usage, torch Softmax(dim=0)).
    out1 = jax.block_until_ready(ann_v1_forward(x[0], w1, b1, w2, b2))
    assert out1.shape == (OUTPUTS,)
    assert jnp.allclose(out1, ref[0], atol=2e-3, rtol=2e-3)

    print("KERNEL_OK")
</pallas_src>

<mosaic_0001>
module attributes {stable_mosaic.version = 11 : i64} {
  func.func @_ann_v1_kernel(%arg0: i32, %arg1: memref<32x16xbf16, #tpu.memory_space<vmem>>, %arg2: memref<16x256xbf16, #tpu.memory_space<vmem>>, %arg3: memref<1x256xf32, #tpu.memory_space<vmem>>, %arg4: memref<256x128xbf16, #tpu.memory_space<vmem>>, %arg5: memref<1x128xf32, #tpu.memory_space<vmem>>, %arg6: memref<32x128xf32, #tpu.memory_space<vmem>>) attributes {dimension_semantics = [#tpu.dimension_semantics<parallel>], iteration_bounds = array<i64: 1>, scalar_prefetch = 0 : i64, scratch_operands = 0 : i64, tpu.core_type = #tpu.core_type<tc>, window_params = [{transform_indices = @transform_0, window_bounds = array<i64: 32, 16>}, {pipeline_mode = #tpu.pipeline_mode<synchronous>, transform_indices = @transform_1, window_bounds = array<i64: 16, 256>}, {pipeline_mode = #tpu.pipeline_mode<synchronous>, transform_indices = @transform_2, window_bounds = array<i64: 1, 256>}, {pipeline_mode = #tpu.pipeline_mode<synchronous>, transform_indices = @transform_3, window_bounds = array<i64: 256, 128>}, {pipeline_mode = #tpu.pipeline_mode<synchronous>, transform_indices = @transform_4, window_bounds = array<i64: 1, 128>}, {transform_indices = @transform_5, window_bounds = array<i64: 32, 128>}]} {
    %c0 = arith.constant 0 : index
    %c0_0 = arith.constant 0 : index
    %0 = vector.load %arg1[%c0, %c0_0] : memref<32x16xbf16, #tpu.memory_space<vmem>>, vector<32x16xbf16>
    %c0_1 = arith.constant 0 : index
    %c0_2 = arith.constant 0 : index
    %1 = vector.load %arg2[%c0_1, %c0_2] : memref<16x256xbf16, #tpu.memory_space<vmem>>, vector<16x256xbf16>
    %cst = arith.constant dense<0.000000e+00> : vector<32x256xf32>
    %2 = tpu.matmul %0, %1, %cst {dimension_numbers = #tpu.dot_dimension_numbers<[1], [0], [0], [1], [0, 0, 1, 1], [], []>} : vector<32x16xbf16>, vector<16x256xbf16>, vector<32x256xf32> -> vector<32x256xf32>
    %c0_3 = arith.constant 0 : index
    %c0_4 = arith.constant 0 : index
    %3 = vector.load %arg3[%c0_3, %c0_4] : memref<1x256xf32, #tpu.memory_space<vmem>>, vector<1x256xf32>
    %4 = vector.broadcast %3 : vector<1x256xf32> to vector<32x256xf32>
    %5 = arith.addf %2, %4 : vector<32x256xf32>
    %cst_5 = arith.constant 0.000000e+00 : f32
    %6 = vector.broadcast %cst_5 : f32 to vector<32x256xf32>
    %7 = arith.maximumf %5, %6 : vector<32x256xf32>
    %c0_6 = arith.constant 0 : index
    %c0_7 = arith.constant 0 : index
    %8 = vector.load %arg4[%c0_6, %c0_7] : memref<256x128xbf16, #tpu.memory_space<vmem>>, vector<256x128xbf16>
    %9 = arith.extf %8 : vector<256x128xbf16> to vector<256x128xf32>
    %cst_8 = arith.constant dense<0.000000e+00> : vector<32x128xf32>
    %10 = tpu.matmul %7, %9, %cst_8 {dimension_numbers = #tpu.dot_dimension_numbers<[1], [0], [0], [1], [0, 0, 1, 1], [], []>} : vector<32x256xf32>, vector<256x128xf32>, vector<32x128xf32> -> vector<32x128xf32>
    %c0_9 = arith.constant 0 : index
    %c0_10 = arith.constant 0 : index
    %11 = vector.load %arg5[%c0_9, %c0_10] : memref<1x128xf32, #tpu.memory_space<vmem>>, vector<1x128xf32>
    %12 = vector.broadcast %11 : vector<1x128xf32> to vector<32x128xf32>
    %13 = arith.addf %10, %12 : vector<32x128xf32>
    %cst_11 = arith.constant dense<0xFF800000> : vector<32xf32>
    %14 = vector.multi_reduction <maximumf>, %13, %cst_11 [1] : vector<32x128xf32> to vector<32xf32>
    %15 = vector.shape_cast %14 : vector<32xf32> to vector<32x1xf32>
    %16 = vector.broadcast %15 : vector<32x1xf32> to vector<32x128xf32>
    %17 = arith.subf %13, %16 : vector<32x128xf32>
    %18 = math.exp %17 : vector<32x128xf32>
    %cst_12 = arith.constant dense<0.000000e+00> : vector<32xf32>
    %19 = vector.multi_reduction <add>, %18, %cst_12 [1] : vector<32x128xf32> to vector<32xf32>
    %20 = vector.shape_cast %19 : vector<32xf32> to vector<32x1xf32>
    %21 = vector.broadcast %20 : vector<32x1xf32> to vector<32x128xf32>
    %22 = arith.divf %18, %21 : vector<32x128xf32>
    %c0_13 = arith.constant 0 : index
    %c0_14 = arith.constant 0 : index
    %23 = vector.load %arg6[%c0_13, %c0_14] : memref<32x128xf32, #tpu.memory_space<vmem>>, vector<32x128xf32>
    tpu.vector_store %arg6[%c0_13, %c0_14], %22 {strides = array<i32>} : memref<32x128xf32, #tpu.memory_space<vmem>>, vector<32x128xf32>,
    return
  }
  func.func @transform_0(%arg0: i32) -> (i32, i32) {
    %c0_i32 = arith.constant 0 : i32
    %c0_i32_0 = arith.constant 0 : i32
    return %arg0, %c0_i32 : i32, i32
  }
  func.func @transform_1(%arg0: i32) -> (i32, i32) {
    %c0_i32 = arith.constant 0 : i32
    %c0_i32_0 = arith.constant 0 : i32
    %c0_i32_1 = arith.constant 0 : i32
    return %c0_i32, %c0_i32_0 : i32, i32
  }
  func.func @transform_2(%arg0: i32) -> (i32, i32) {
    %c0_i32 = arith.constant 0 : i32
    %c0_i32_0 = arith.constant 0 : i32
    %c0_i32_1 = arith.constant 0 : i32
    return %c0_i32, %c0_i32_0 : i32, i32
  }
  func.func @transform_3(%arg0: i32) -> (i32, i32) {
    %c0_i32 = arith.constant 0 : i32
    %c0_i32_0 = arith.constant 0 : i32
    %c0_i32_1 = arith.constant 0 : i32
    return %c0_i32, %c0_i32_0 : i32, i32
  }
  func.func @transform_4(%arg0: i32) -> (i32, i32) {
    %c0_i32 = arith.constant 0 : i32
    %c0_i32_0 = arith.constant 0 : i32
    %c0_i32_1 = arith.constant 0 : i32
    return %c0_i32, %c0_i32_0 : i32, i32
  }
  func.func @transform_5(%arg0: i32) -> (i32, i32) {
    %c0_i32 = arith.constant 0 : i32
    %c0_i32_0 = arith.constant 0 : i32
    return %arg0, %c0_i32 : i32, i32
  }
}

</mosaic_0001>

<bundles_post_ra>
// kernel: tpu_custom_call.1
= control target key start
LH: loop header
LB: loop body
LE: loop exit
PB: predicated region body
PF: predicated region fallthrough
CT: control target
= control target key end

     0   :  { %10 = vsyncpa [#allocation3], 0  ;;  %s652_s0 = inlined_call_operand.vmem [shape: bf16[32,16], index: 0, kind: input, shape index: {}]   ;;  %s653_s1 = inlined_call_operand.vmem [shape: bf16[16,256], index: 1, kind: input, shape index: {}]   ;;  %s654_s2 = inlined_call_operand.vmem [shape: f32[1,256], index: 2, kind: input, shape index: {}]   ;;  %s655_s3 = inlined_call_operand.hbm [shape: bf16[256,128], index: 3, kind: input, shape index: {}]   ;;  %s656_s4 = inlined_call_operand.vmem [shape: f32[1,128], index: 4, kind: input, shape index: {}]   ;;  %s657_s5 = inlined_call_operand.hbm [shape: f32[32,128], index: 5, kind: output, shape index: {}]  }
   0x1   :  { %11 = vsyncpa [#allocation4], 0  ;;  %s589_s18 = smov [#allocation2]  }
   0x2   :  { %s23_s19 = sshll.u32 %s589_s18, 4  ;;  %s24_s19 = int_to_ptr.vmem [resolvable:$true] %s23_s19 }
   0x3   :  { %s553_s20 = scalar_lea.vmem %s24_s19, 2048  ;;  %p558_p1 = scmp.lt.s32.totalorder %s24_s19, %s24_s19 }
   0x4   :  { %p554_p0 = scmp.ne.s32.totalorder %s24_s19, %s553_s20  ;;  %p559_p2 = scmp.lt.s32.totalorder %s553_s20, %s553_s20 }
   0x6   :  { %p560_p3 = por %p559_p2, %p558_p1 }
   0x8   :  { %p561_p4 = pnand %p560_p3, %p554_p0 }
   0xa   :  { %564 = shalt.err (!%p561_p4)
}
   0xb   :  { %s590_s21 = smov 64   ;;  %s591_s22 = smov 4  }
   0xc   :  { %29 = dma.hbm_to_vmem [thread:$0]  %s655_s3, 2048, %s24_s19, [#allocation3], %s590_s21, %s590_s21, %s591_s22  }
   0xd   :  { %585 = dma.done.wait [#allocation3], 2048  }
   0xe   :  { %586 = vsyncadd [#allocation3], 4294965248  ;;  %v592_v0 = vmov 0   ;;  %v524_v1 = vld [vmem:[%s653_s1 + $0x4] ss:$8 sps:$4 sm:$0xff]   ;;  %vm74_vm0 = vcmask 130048   ;;  %v44_v53 = vlaneseq }
   0xf   :  { %113 = vmatprep.mubr.bf16.mxu0 %v592_v0  ;;  %v526_v2 = vld [vmem:[%s653_s1] ss:$8 sps:$4 sm:$0xff]   ;;  %95 = vmatprep.subr.bf16.mxu0 %v524_v1  ;;  %v440_v4 = vld [vmem:[#allocation2 + $0x78] sm:$0xff]   ;;  %v439_v9 = vld [vmem:[#allocation2 + $0x70] sm:$0xff]  }
  0x10   :  { %v527_v3 = vld [vmem:[%s652_s0] sm:$0xff]   ;;  %96 = vmatpush1.bf16.msra.mxu0 %v526_v2  ;;  %v432_v5 = vld [vmem:[#allocation2 + $0x38] sm:$0xff]   ;;  %v425_v6 = vunpack.c.h.bf16 %v440_v4  ;;  %v424_v8 = vunpack.c.l.bf16 %v440_v4  ;;  %v431_v10 = vld [vmem:[#allocation2 + $0x30] sm:$0xff]   ;;  %v421_v12 = vunpack.c.h.bf16 %v439_v9  ;;  %v420_v15 = vunpack.c.l.bf16 %v439_v9 }
  0x11   :  { %v393_v7 = vunpack.c.h.bf16 %v432_v5  ;;  %v392_v11 = vunpack.c.l.bf16 %v432_v5  ;;  %v389_v13 = vunpack.c.h.bf16 %v431_v10  ;;  %v438_v14 = vld [vmem:[#allocation2 + $0x68] sm:$0xff]   ;;  %v388_v17 = vunpack.c.l.bf16 %v431_v10  ;;  %v437_v21 = vld [vmem:[#allocation2 + $0x60] sm:$0xff]   ;;  %v436_v27 = vld [vmem:[#allocation2 + $0x58] sm:$0xff]  }
  0x12   :  { %441 = vmatprep.subr.mxu0 %v425_v6  ;;  %485 = vmatprep.subr.mxu1 %v425_v6  ;;  %v430_v16 = vld [vmem:[#allocation2 + $0x28] sm:$0xff]   ;;  %v417_v19 = vunpack.c.h.bf16 %v438_v14  ;;  %v416_v22 = vunpack.c.l.bf16 %v438_v14  ;;  %v429_v23 = vld [vmem:[#allocation2 + $0x20] sm:$0xff]   ;;  %v413_v25 = vunpack.c.h.bf16 %v437_v21  ;;  %v412_v28 = vunpack.c.l.bf16 %v437_v21  ;;  %v428_v29 = vld [vmem:[#allocation2 + $0x18] sm:$0xff]  }
  0x13   :  { %359 = vmatmul.mubr.msk.bf16.vlgmr.msra.gmra.mxu0 %vm74_vm0, %v527_v3  ;;  %501 = vmatpush3.msra.mxu1 %v393_v7  ;;  %v528_v18 = vld [vmem:[%s652_s0 + $0x8] sm:$0xff]   ;;  %v385_v20 = vunpack.c.h.bf16 %v430_v16  ;;  %v384_v24 = vunpack.c.l.bf16 %v430_v16  ;;  %v381_v26 = vunpack.c.h.bf16 %v429_v23  ;;  %v380_v30 = vunpack.c.l.bf16 %v429_v23  ;;  %v435_v33 = vld [vmem:[#allocation2 + $0x50] sm:$0xff]   ;;  %v433_v47 = vld [vmem:[#allocation2 + $0x40] sm:$0xff]  }
  0x14   :  { %123 = vmatprep.mubr.bf16.mxu0 %v592_v0  ;;  %442 = vmatpush3.msra.mxu0 %v393_v7  ;;  %v409_v31 = vunpack.c.h.bf16 %v436_v27  ;;  %v377_v32 = vunpack.c.h.bf16 %v428_v29  ;;  %v408_v34 = vunpack.c.l.bf16 %v436_v27  ;;  %v427_v35 = vld [vmem:[#allocation2 + $0x10] sm:$0xff]   ;;  %v376_v36 = vunpack.c.l.bf16 %v428_v29  ;;  %v434_v41 = vld [vmem:[#allocation2 + $0x48] sm:$0xff]   ;;  %v363_v49 = vld [vmem:[#allocation2] sm:$0xff]  }
  0x15   :  { %443 = vmatprep.subr.mxu0 %v424_v8  ;;  %486 = vmatprep.subr.mxu1 %v424_v8  ;;  %v405_v37 = vunpack.c.h.bf16 %v435_v33  ;;  %v373_v38 = vunpack.c.h.bf16 %v427_v35  ;;  %v404_v39 = vunpack.c.l.bf16 %v435_v33  ;;  %v372_v40 = vunpack.c.l.bf16 %v427_v35  ;;  %v426_v43 = vld [vmem:[#allocation2 + $0x8] sm:$0xff]   ;;  %v42_v56 = vld [vmem:[%s654_s2] sm:$0x3] }
  0x16   :  { %444 = vmatpush3.msra.mxu0 %v392_v11  ;;  %502 = vmatpush3.msra.mxu1 %v392_v11  ;;  %v401_v42 = vunpack.c.h.bf16 %v434_v41  ;;  %v369_v44 = vunpack.c.h.bf16 %v426_v43  ;;  %v400_v45 = vunpack.c.l.bf16 %v434_v41  ;;  %v368_v46 = vunpack.c.l.bf16 %v426_v43 }
  0x17   :  { %445 = vmatprep.subr.mxu0 %v421_v12  ;;  %487 = vmatprep.subr.mxu1 %v421_v12  ;;  %v397_v48 = vunpack.c.h.bf16 %v433_v47  ;;  %v365_v50 = vunpack.c.h.bf16 %v363_v49  ;;  %v396_v51 = vunpack.c.l.bf16 %v433_v47  ;;  %v364_v52 = vunpack.c.l.bf16 %v363_v49 }
  0x18   :  { %446 = vmatpush3.msra.mxu0 %v389_v13  ;;  %503 = vmatpush3.msra.mxu1 %v389_v13  ;;  %v45_v54 = vshrl.u32 %v44_v53, 7 }
  0x19   :  { %447 = vmatprep.subr.mxu0 %v420_v15  ;;  %488 = vmatprep.subr.mxu1 %v420_v15 }
  0x1a   :  { %448 = vmatpush3.msra.mxu0 %v388_v17  ;;  %504 = vmatpush3.msra.mxu1 %v388_v17  ;;  %v46_v55 = vsub.s32 0, %v45_v54  ;;  %v50_v57 = vsub.s32 1, %v45_v54 }
  0x1b   :  { %360 = vmatmul.mubr.msk.bf16.gmra.mxu0 %vm74_vm0, %v528_v18  ;;  %449 = vmatprep.subr.mxu0 %v417_v19 }
  0x1c   :  { %450 = vmatpush3.msra.mxu0 %v385_v20  ;;  %489 = vmatprep.subr.mxu1 %v417_v19  ;;  %v47_v58 = vrot.slane %v42_v56, %v46_v55  ;;  %v51_v59 = vrot.slane %v42_v56, %v50_v57 }
  0x1d   :  { %451 = vmatprep.subr.mxu0 %v416_v22  ;;  %505 = vmatpush3.msra.mxu1 %v385_v20 }
  0x1e   :  { %452 = vmatpush3.msra.mxu0 %v384_v24  ;;  %490 = vmatprep.subr.mxu1 %v416_v22  ;;  %v361_v22 = vld [vmem:[%s656_s4] ss:$0 sm:$0xff]  ;;  %s593_s4 = smov [#allocation5]  }
  0x1f   :  { %453 = vmatprep.subr.mxu0 %v413_v25  ;;  %506 = vmatpush3.msra.mxu1 %v384_v24  ;;  %s343_s8 = sshll.u32 %s593_s4, 4  ;;  %s344_s8 = int_to_ptr.vmem [resolvable:$true] %s343_s8 }
  0x20   :  { %454 = vmatpush3.msra.mxu0 %v381_v26  ;;  %491 = vmatprep.subr.mxu1 %v413_v25  ;;  %s565_s9 = scalar_lea.vmem %s344_s8, 512  ;;  %p570_p6 = scmp.lt.s32.totalorder %s344_s8, %s344_s8 }
  0x21   :  { %455 = vmatprep.subr.mxu0 %v412_v28  ;;  %507 = vmatpush3.msra.mxu1 %v381_v26  ;;  %p566_p5 = scmp.ne.s32.totalorder %s344_s8, %s565_s9  ;;  %p571_p7 = scmp.lt.s32.totalorder %s565_s9, %s565_s9 }
  0x22   :  { %456 = vmatpush3.msra.mxu0 %v380_v30  ;;  %492 = vmatprep.subr.mxu1 %v412_v28 }
  0x23   :  { %457 = vmatprep.subr.mxu0 %v409_v31  ;;  %508 = vmatpush3.msra.mxu1 %v380_v30  ;;  %p572_p8 = por %p571_p7, %p570_p6 }
  0x24   :  { %458 = vmatpush3.msra.mxu0 %v377_v32  ;;  %493 = vmatprep.subr.mxu1 %v409_v31 }
  0x25   :  { %459 = vmatprep.subr.mxu0 %v408_v34  ;;  %509 = vmatpush3.msra.mxu1 %v377_v32  ;;  %p573_p9 = pnand %p572_p8, %p566_p5 }
  0x26   :  { %460 = vmatpush3.msra.mxu0 %v376_v36  ;;  %494 = vmatprep.subr.mxu1 %v408_v34 }
  0x27   :  { %461 = vmatprep.subr.mxu0 %v405_v37  ;;  %510 = vmatpush3.msra.mxu1 %v376_v36 }
  0x28   :  { %462 = vmatpush3.msra.mxu0 %v373_v38  ;;  %495 = vmatprep.subr.mxu1 %v405_v37 }
  0x29   :  { %463 = vmatprep.subr.mxu0 %v404_v39  ;;  %511 = vmatpush3.msra.mxu1 %v373_v38 }
  0x2a   :  { %464 = vmatpush3.msra.mxu0 %v372_v40  ;;  %496 = vmatprep.subr.mxu1 %v404_v39 }
  0x2b   :  { %512 = vmatpush3.msra.mxu1 %v372_v40  ;;  %465 = vmatprep.subr.mxu0 %v401_v42 }
  0x2c   :  { %497 = vmatprep.subr.mxu1 %v401_v42  ;;  %466 = vmatpush3.msra.mxu0 %v369_v44 }
  0x2d   :  { %513 = vmatpush3.msra.mxu1 %v369_v44  ;;  %467 = vmatprep.subr.mxu0 %v400_v45 }
  0x2e   :  { %498 = vmatprep.subr.mxu1 %v400_v45  ;;  %468 = vmatpush3.msra.mxu0 %v368_v46 }
  0x2f   :  { %514 = vmatpush3.msra.mxu1 %v368_v46  ;;  %469 = vmatprep.subr.mxu0 %v397_v48 }
  0x30   :  { %499 = vmatprep.subr.mxu1 %v397_v48  ;;  %470 = vmatpush3.msra.mxu0 %v365_v50 }
  0x31   :  { %515 = vmatpush3.msra.mxu1 %v365_v50  ;;  %471 = vmatprep.subr.mxu0 %v396_v51 }
  0x32   :  { %500 = vmatprep.subr.mxu1 %v396_v51  ;;  %472 = vmatpush3.msra.mxu0 %v364_v52 }
  0x33   :  { %516 = vmatpush3.msra.mxu1 %v364_v52 }
  0xd3   :  { %v115_v60 = vpop.f32.mrf.mxu0 }
  0xd4   :  { %v116_v61 = vadd.f32 %v115_v60, %v47_v58 }
  0xd5   :  { %v117_v62 = vpop.f32.mrf.mxu0 }
  0xd6   :  { %v118_v63 = vadd.f32 %v117_v62, %v51_v59  ;;  %v134_v2 = vmax.f32 %v116_v61, 0.0 }
  0xd7   :  { %v119_v0 = vpop.f32.mrf.mxu0 }
  0xd8   :  { %v135_v1 = vmax.f32 %v118_v63, 0.0  ;;  %v120_v3 = vadd.f32 %v119_v0, %v47_v58 }
  0xd9   :  { %v121_v4 = vpop.f32.mrf.mxu0 }
  0xda   :  { %277 = vmatprep.mubr.f32.mxu0 %v135_v1  ;;  %v122_v5 = vadd.f32 %v121_v4, %v51_v59  ;;  %v136_v8 = vmax.f32 %v120_v3, 0.0 }
  0xdb   :  { %v125_v6 = vpop.f32.mrf.mxu0  ;;  %278 = vmatmul.mubr.f32.vlgmr.msra.gmra.mxu0 %v134_v2 }
  0xdc   :  { %v137_v7 = vmax.f32 %v122_v5, 0.0  ;;  %v126_v9 = vadd.f32 %v125_v6, %v47_v58 }
  0xdd   :  { %v127_v10 = vpop.f32.mrf.mxu0 }
  0xde   :  { %v128_v11 = vadd.f32 %v127_v10, %v51_v59  ;;  %282 = vmatprep.mubr.f32.mxu1 %v137_v7  ;;  %v138_v14 = vmax.f32 %v126_v9, 0.0 }
  0xdf   :  { %v129_v12 = vpop.f32.mrf.mxu0  ;;  %283 = vmatmul.mubr.f32.vlgmr.msra.gmra.mxu1 %v136_v8 }
  0xe0   :  { %v139_v13 = vmax.f32 %v128_v11, 0.0  ;;  %v130_v15 = vadd.f32 %v129_v12, %v47_v58 }
  0xe1   :  { %v131_v16 = vpop.f32.mrf.mxu0 }
  0xe2   :  { %v132_v17 = vadd.f32 %v131_v16, %v51_v59  ;;  %287 = vmatprep.mubr.f32.mxu1 %v139_v13  ;;  %v140_v19 = vmax.f32 %v130_v15, 0.0 }
  0xe3   :  { %288 = vmatmul.mubr.f32.gmra.mxu1 %v138_v14 }
  0xe4   :  { %v141_v18 = vmax.f32 %v132_v17, 0.0 }
  0xe6   :  { %292 = vmatprep.mubr.f32.mxu1 %v141_v18 }
  0xe7   :  { %293 = vmatmul.mubr.f32.gmra.mxu1 %v140_v19 }
 0x19b   :  { %v473_v20 = vpop.f32.mrf.mxu0 }
 0x19d   :  { %v474_v21 = vpop.f32.mrf.mxu0 }
 0x19e   :  { %v475_v23 = vadd.f32 %v474_v21, %v473_v20 }
 0x19f   :  { %v476_v24 = vpop.f32.mrf.mxu1 }
 0x1a0   :  { %v280_v25 = vadd.f32 %v475_v23, %v361_v22 }
 0x1a1   :  { %v477_v26 = vpop.f32.mrf.mxu1 }
 0x1a2   :  { %v478_v27 = vadd.f32 %v477_v26, %v476_v24  ;;  %298 = vmax.xlane.f32.xlu0 %v280_v25 }
 0x1a3   :  { %v479_v28 = vpop.f32.mrf.mxu1 }
 0x1a4   :  { %v285_v29 = vadd.f32 %v478_v27, %v361_v22 }
 0x1a5   :  { %v480_v30 = vpop.f32.mrf.mxu1 }
 0x1a6   :  { %v481_v31 = vadd.f32 %v480_v30, %v479_v28  ;;  %300 = vmax.xlane.f32.xlu0 %v285_v29 }
 0x1a7   :  { %v482_v32 = vpop.f32.mrf.mxu1 }
 0x1a8   :  { %v290_v33 = vadd.f32 %v481_v31, %v361_v22 }
 0x1a9   :  { %v483_v34 = vpop.f32.mrf.mxu1 }
 0x1aa   :  { %v484_v35 = vadd.f32 %v483_v34, %v482_v32  ;;  %302 = vmax.xlane.f32.xlu1 %v290_v33 }
 0x1ac   :  { %v295_v36 = vadd.f32 %v484_v35, %v361_v22 }
 0x1ae   :  { %304 = vmax.xlane.f32.xlu1 %v295_v36 }
 0x22b   :  { %v299_v37 = vpop.xlane.xlu0 %298 }
 0x22c   :  { %v306_v38 = vsub.f32 %v280_v25, %v299_v37 }
 0x22e   :  { %v310_v39 = vmul.f32 1.442695, %v306_v38 }
 0x22f   :  { %v301_v40 = vpop.xlane.xlu0 %300 }
 0x230   :  { %529 = vpow2.f32 %v310_v39  ;;  %v307_v41 = vsub.f32 %v285_v29, %v301_v40 }
 0x232   :  { %v312_v42 = vmul.f32 1.442695, %v307_v41 }
 0x233   :  { %v303_v43 = vpop.xlane.xlu1 %302 }
 0x234   :  { %531 = vpow2.f32 %v312_v42  ;;  %v308_v44 = vsub.f32 %v290_v33, %v303_v43 }
 0x236   :  { %v314_v45 = vmul.f32 1.442695, %v308_v44 }
 0x237   :  { %v305_v46 = vpop.xlane.xlu1 %304 }
 0x238   :  { %533 = vpow2.f32 %v314_v45  ;;  %v309_v47 = vsub.f32 %v295_v36, %v305_v46 }
 0x23a   :  { %v316_v48 = vmul.f32 1.442695, %v309_v47 }
 0x23c   :  { %535 = vpow2.f32 %v316_v48 }
 0x23d   :  { %v530_v49 = vpop.eup %529 }
 0x23e   :  { %318 = vadd.xlane.f32.xlu0 %v530_v49 }
 0x241   :  { %v532_v50 = vpop.eup %531 }
 0x242   :  { %320 = vadd.xlane.f32.xlu1 %v532_v50 }
 0x245   :  { %v534_v51 = vpop.eup %533 }
 0x246   :  { %322 = vadd.xlane.f32.xlu0 %v534_v51 }
 0x249   :  { %v536_v52 = vpop.eup %535 }
 0x24a   :  { %324 = vadd.xlane.f32.xlu1 %v536_v52 }
 0x2c7   :  { %v319_v53 = vpop.xlane.xlu0 %318 }
 0x2c8   :  { %537 = vrcp.f32 %v319_v53 }
 0x2cb   :  { %v321_v54 = vpop.xlane.xlu1 %320 }
 0x2cc   :  { %539 = vrcp.f32 %v321_v54 }
 0x2cf   :  { %v323_v55 = vpop.xlane.xlu0 %322 }
 0x2d0   :  { %541 = vrcp.f32 %v323_v55 }
 0x2d3   :  { %v325_v56 = vpop.xlane.xlu1 %324 }
 0x2d4   :  { %543 = vrcp.f32 %v325_v56 }
 0x2d5   :  { %v538_v57 = vpop.eup %537 }
 0x2d6   :  { %v327_v58 = vmul.f32 %v538_v57, %v530_v49 }
 0x2d8   :  { %334 = vst [vmem:[#allocation5] sm:$0xff] %v327_v58 }
 0x2d9   :  { %v540_v59 = vpop.eup %539 }
 0x2da   :  { %v329_v60 = vmul.f32 %v540_v59, %v532_v50 }
 0x2dc   :  { %335 = vst [vmem:[#allocation5 + $0x8] sm:$0xff] %v329_v60 }
 0x2dd   :  { %v542_v61 = vpop.eup %541 }
 0x2de   :  { %v331_v62 = vmul.f32 %v542_v61, %v534_v51 }
 0x2e0   :  { %336 = vst [vmem:[#allocation5 + $0x10] sm:$0xff] %v331_v62 }
 0x2e1   :  { %v544_v63 = vpop.eup %543 }
 0x2e2   :  { %v333_v0 = vmul.f32 %v544_v63, %v536_v52 }
 0x2e4   :  { %337 = vst [vmem:[#allocation5 + $0x18] sm:$0xff] %v333_v0 }
 0x2e5   :  { %576 = shalt.err (!%p573_p9)
}
 0x2e6   :  { %s594_s10 = smov 128   ;;  %s595_s11 = smov 8  }
 0x2e7   :  { %349 = dma.vmem_to_hbm [thread:$0]  %s344_s8, 512, %s657_s5, [#allocation4], %s594_s10, %s594_s10, %s595_s11  }
 0x2e8   :  { %587 = dma.done.wait [#allocation4], 512  }
 0x2e9   :  { %588 = vsyncadd [#allocation4], 4294966784 }
 0x2ea   :  { %353 = vsyncpa [#allocation3], 1 }
 0x2eb   :  { %354 = vsyncpa [#allocation4], 1 }

</bundles_post_ra>
